<compile_context>
chip_gen: v7x
topology: tpu7x:2x2x1
jax: 0.10.0
libtpu: 0.0.40
codegen_flags: <defaults>
</compile_context>

<pallas_src>
import jax
import jax.numpy as jnp
from jax.experimental import pallas as pl
from jax.experimental.pallas import tpu as pltpu

LEAKY_SLOPE = 0.2  # module default: leaky_relu_slope=0.2


def _leaky_relu(x, slope):
    return jnp.where(x > 0, x, slope * x)


def _round_up(x, m):
    return ((x + m - 1) // m) * m


def _cdiv(a, b):
    return (a + b - 1) // b


# --------------------------------------------------------------------------- kernel
def classifier_head_kernel(x_ref, w1_ref, b1_ref, w2_ref, b2_ref, w3_ref, b3_ref,
                           out_ref):
    """Fused: Linear(512) -> LeakyReLU -> Linear(256) -> LeakyReLU -> Linear(n_cls_pad).

    x arrives in f32 and is cast to the weight operand dtype on the VPU (hides under
    the MXU). Accumulation is always f32 via preferred_element_type; bias / LeakyReLU
    math stays in f32 (safe on v5e, which has no bf16 VALU).
    """
    x = x_ref[...].astype(w1_ref.dtype)
    h = jnp.dot(x, w1_ref[...], preferred_element_type=jnp.float32) + b1_ref[...]
    h = _leaky_relu(h, LEAKY_SLOPE)
    h = jnp.dot(h.astype(w2_ref.dtype), w2_ref[...],
                preferred_element_type=jnp.float32) + b2_ref[...]
    h = _leaky_relu(h, LEAKY_SLOPE)
    out_ref[...] = (jnp.dot(h.astype(w3_ref.dtype), w3_ref[...],
                            preferred_element_type=jnp.float32)
                    + b3_ref[...]).astype(out_ref.dtype)


# ----------------------------------------------------------------- weight preparation
def prepare_params(params, *, compute_dtype=jnp.bfloat16):
    """Cast weights to the MXU operand dtype and lane-pad the class dim to 128.

    Call ONCE at model init and reuse the result on every forward call (this is the
    per-call weight cast/pad pass the review flagged).
    """
    w1, b1, w2, b2, w3, b3 = params
    compute_dtype = jnp.dtype(compute_dtype)
    n_cls = w3.shape[1]
    n_cls_pad = _round_up(max(n_cls, 128), 128)

    w3p = jnp.zeros((w3.shape[0], n_cls_pad), w3.dtype).at[:, :n_cls].set(w3)
    b3p = jnp.zeros((1, n_cls_pad), b3.dtype).at[:, :n_cls].set(b3)

    prepared = dict(
        w1=w1.astype(compute_dtype),
        b1=b1.astype(jnp.float32),
        w2=w2.astype(compute_dtype),
        b2=b2.astype(jnp.float32),
        w3=w3p.astype(compute_dtype),
        b3=b3p.astype(jnp.float32),
        n_cls=n_cls,
        n_cls_pad=n_cls_pad,
    )
    # Materialize now so the cast/pad cost is paid once, not lazily on first forward.
    prepared = {k: (jax.block_until_ready(v) if isinstance(v, jax.Array) else v)
                for k, v in prepared.items()}
    return prepared


# ------------------------------------------------------------------------- forward
def pathology_classifier_forward(pr_representations, prepared, *,
                                 max_tile_n=1024, min_grid_steps=1):
    """Runs the classifier head; returns (logits, pr_representations) like the torch module.

    `prepared` comes from prepare_params().  Set min_grid_steps=2 on v7x (2 TensorCores)
    for large batches so the "parallel" batch axis can shard across both cores;
    v5e/v6e are single-TC and prefer the default 1 (fewest grid steps).
    """
    w1c, b1c = prepared["w1"], prepared["b1"]
    w2c, b2c = prepared["w2"], prepared["b2"]
    w3c, b3c = prepared["w3"], prepared["b3"]
    n_cls, n_cls_pad = prepared["n_cls"], prepared["n_cls_pad"]

    n, d_in = pr_representations.shape
    h1 = w1c.shape[1]          # 512
    h2 = w2c.shape[1]          # 256

    # --- balanced batch tiles (x and out are f32 -> sublane granularity is 8) ---
    sublane = 8
    num_tiles = max(_cdiv(n, max_tile_n), min_grid_steps)
    tile_n = _round_up(_cdiv(n, num_tiles), sublane)
    n_pad = _round_up(n, tile_n)
    grid = (n_pad // tile_n,)

    x = pr_representations.astype(jnp.float32)   # no operand-dtype cast in the wrapper
    if n_pad != n:
        x = jnp.pad(x, ((0, n_pad - n), (0, 0)))  # zero rows, sliced off below

    rep = lambda i: (0, 0)    # weights/biases: grid-invariant full block (no re-DMA)

    w_item = jnp.dtype(w1c.dtype).itemsize
    flops = 2 * n_pad * (d_in * h1 + h1 * h2 + h2 * n_cls_pad)
    bytes_accessed = (n_pad * d_in * 4                                   # x (f32)
                      + (d_in * h1 + h1 * h2 + h2 * n_cls_pad) * w_item  # weights
                      + (h1 + h2 + n_cls_pad) * 4                        # biases (f32)
                      + n_pad * n_cls_pad * 4)                           # out (f32)

    out = pl.pallas_call(
        classifier_head_kernel,
        out_shape=jax.ShapeDtypeStruct((n_pad, n_cls_pad), jnp.float32),
        grid=grid,
        in_specs=[
            pl.BlockSpec((tile_n, d_in), lambda i: (i, 0)),   # x tile over batch
            pl.BlockSpec((d_in, h1), rep),                    # W1^T
            pl.BlockSpec((1, h1), rep),                       # b1
            pl.BlockSpec((h1, h2), rep),                      # W2^T
            pl.BlockSpec((1, h2), rep),                       # b2
            pl.BlockSpec((h2, n_cls_pad), rep),               # W3^T (lane-padded)
            pl.BlockSpec((1, n_cls_pad), rep),                # b3   (lane-padded)
        ],
        out_specs=pl.BlockSpec((tile_n, n_cls_pad), lambda i: (i, 0)),
        compiler_params=pltpu.CompilerParams(
            dimension_semantics=("parallel",)),
        cost_estimate=pl.CostEstimate(
            flops=flops, transcendentals=0, bytes_accessed=bytes_accessed),
    )(x, w1c, b1c, w2c, b2c, w3c, b3c)

    logits = out[:n, :n_cls]
    return logits, pr_representations


# --------------------------------------------------------------------- init / reference
def init_params(key, d_in, output_classes):
    """Deterministic init matching torch.nn.Linear default (U(-1/sqrt(fan_in), +1/sqrt(fan_in))).
    Weights are stored transposed: (in_dim, out_dim)."""
    def linear(k, fan_in, fan_out):
        kw, kb = jax.random.split(k)
        bound = 1.0 / jnp.sqrt(fan_in)
        w = jax.random.uniform(kw, (fan_in, fan_out), jnp.float32, -bound, bound)
        b = jax.random.uniform(kb, (1, fan_out), jnp.float32, -bound, bound)
        return w, b

    k1, k2, k3 = jax.random.split(key, 3)
    w1, b1 = linear(k1, d_in, 512)
    w2, b2 = linear(k2, 512, 256)
    w3, b3 = linear(k3, 256, output_classes)
    return (w1, b1, w2, b2, w3, b3)


def reference_forward(x, params):
    w1, b1, w2, b2, w3, b3 = params
    h = _leaky_relu(x @ w1 + b1, LEAKY_SLOPE)
    h = _leaky_relu(h @ w2 + b2, LEAKY_SLOPE)
    return h @ w3 + b3


if __name__ == "__main__":
    # Small config consistent with the module:
    feature_type_count = 4
    pr_representation_dim = 32
    output_classes = 6
    n_core_points = 16
    d_in = feature_type_count * feature_type_count * pr_representation_dim  # 512

    key = jax.random.PRNGKey(0)
    k_x, k_p = jax.random.split(key)

    # TODO(synk): PRNet submodule source was not provided; its output
    # `pr_representations` is synthesized here as the kernel input.
    pr_representations = jax.random.normal(k_x, (n_core_points, d_in), jnp.float32)
    params = init_params(k_p, d_in, output_classes)

    ref = reference_forward(pr_representations, params)

    # Default fast path: bf16 operands (all of v5e/v6e/v7x are bf16-native on the MXU),
    # f32 accumulation; weights cast/padded ONCE here and reused.
    prepared_bf16 = prepare_params(params)  # compute_dtype defaults to bf16
    logits_bf16, reps_out = pathology_classifier_forward(pr_representations, prepared_bf16)
    logits_bf16 = jax.block_until_ready(logits_bf16)
    reps_out = jax.block_until_ready(reps_out)
    assert logits_bf16.shape == (n_core_points, output_classes)
    assert jnp.allclose(logits_bf16, ref, atol=5e-2, rtol=5e-2)
    assert jnp.array_equal(reps_out, pr_representations)

    # f32 operand path (bit-faithful to the torch eval forward; strict tolerance).
    prepared_f32 = prepare_params(params, compute_dtype=jnp.float32)
    logits_f32, _ = pathology_classifier_forward(pr_representations, prepared_f32)
    logits_f32 = jax.block_until_ready(logits_f32)
    assert logits_f32.shape == (n_core_points, output_classes)
    assert jnp.allclose(logits_f32, ref, atol=1e-4, rtol=1e-4)

    # Exercise the multi-step "parallel" grid path (what v7x would use for its 2 TCs).
    logits_2step, _ = pathology_classifier_forward(
        pr_representations, prepared_f32, min_grid_steps=2)
    logits_2step = jax.block_until_ready(logits_2step)
    assert jnp.allclose(logits_2step, ref, atol=1e-4, rtol=1e-4)

    print("KERNEL_OK")
</pallas_src>

<mosaic_0001>
module attributes {stable_mosaic.version = 11 : i64} {
  func.func @classifier_head_kernel(%arg0: i32, %arg1: memref<16x512xf32, #tpu.memory_space<vmem>>, %arg2: memref<512x512xbf16, #tpu.memory_space<vmem>>, %arg3: memref<1x512xf32, #tpu.memory_space<vmem>>, %arg4: memref<512x256xbf16, #tpu.memory_space<vmem>>, %arg5: memref<1x256xf32, #tpu.memory_space<vmem>>, %arg6: memref<256x128xbf16, #tpu.memory_space<vmem>>, %arg7: memref<1x128xf32, #tpu.memory_space<vmem>>, %arg8: memref<16x128xf32, #tpu.memory_space<vmem>>) attributes {dimension_semantics = [#tpu.dimension_semantics<parallel>], iteration_bounds = array<i64: 1>, scalar_prefetch = 0 : i64, scratch_operands = 0 : i64, tpu.core_type = #tpu.core_type<tc>, window_params = [{transform_indices = @transform_0, window_bounds = array<i64: 16, 512>}, {pipeline_mode = #tpu.pipeline_mode<synchronous>, transform_indices = @transform_1, window_bounds = array<i64: 512, 512>}, {pipeline_mode = #tpu.pipeline_mode<synchronous>, transform_indices = @transform_2, window_bounds = array<i64: 1, 512>}, {pipeline_mode = #tpu.pipeline_mode<synchronous>, transform_indices = @transform_3, window_bounds = array<i64: 512, 256>}, {pipeline_mode = #tpu.pipeline_mode<synchronous>, transform_indices = @transform_4, window_bounds = array<i64: 1, 256>}, {pipeline_mode = #tpu.pipeline_mode<synchronous>, transform_indices = @transform_5, window_bounds = array<i64: 256, 128>}, {pipeline_mode = #tpu.pipeline_mode<synchronous>, transform_indices = @transform_6, window_bounds = array<i64: 1, 128>}, {transform_indices = @transform_7, window_bounds = array<i64: 16, 128>}]} {
    %c0 = arith.constant 0 : index
    %c0_0 = arith.constant 0 : index
    %0 = vector.load %arg1[%c0, %c0_0] : memref<16x512xf32, #tpu.memory_space<vmem>>, vector<16x512xf32>
    %1 = arith.truncf %0 : vector<16x512xf32> to vector<16x512xbf16>
    %c0_1 = arith.constant 0 : index
    %c0_2 = arith.constant 0 : index
    %2 = vector.load %arg2[%c0_1, %c0_2] : memref<512x512xbf16, #tpu.memory_space<vmem>>, vector<512x512xbf16>
    %cst = arith.constant dense<0.000000e+00> : vector<16x512xf32>
    %3 = tpu.matmul %1, %2, %cst {dimension_numbers = #tpu.dot_dimension_numbers<[1], [0], [0], [1], [0, 0, 1, 1], [], []>} : vector<16x512xbf16>, vector<512x512xbf16>, vector<16x512xf32> -> vector<16x512xf32>
    %c0_3 = arith.constant 0 : index
    %c0_4 = arith.constant 0 : index
    %4 = vector.load %arg3[%c0_3, %c0_4] : memref<1x512xf32, #tpu.memory_space<vmem>>, vector<1x512xf32>
    %5 = vector.broadcast %4 : vector<1x512xf32> to vector<16x512xf32>
    %6 = arith.addf %3, %5 : vector<16x512xf32>
    %cst_5 = arith.constant 0.000000e+00 : f32
    %7 = vector.broadcast %cst_5 : f32 to vector<16x512xf32>
    %8 = arith.cmpf ogt, %6, %7 : vector<16x512xf32>
    %cst_6 = arith.constant 2.000000e-01 : f32
    %9 = vector.broadcast %cst_6 : f32 to vector<16x512xf32>
    %10 = arith.mulf %9, %6 : vector<16x512xf32>
    %11 = arith.select %8, %6, %10 : vector<16x512xi1>, vector<16x512xf32>
    %12 = arith.truncf %11 : vector<16x512xf32> to vector<16x512xbf16>
    %c0_7 = arith.constant 0 : index
    %c0_8 = arith.constant 0 : index
    %13 = vector.load %arg4[%c0_7, %c0_8] : memref<512x256xbf16, #tpu.memory_space<vmem>>, vector<512x256xbf16>
    %cst_9 = arith.constant dense<0.000000e+00> : vector<16x256xf32>
    %14 = tpu.matmul %12, %13, %cst_9 {dimension_numbers = #tpu.dot_dimension_numbers<[1], [0], [0], [1], [0, 0, 1, 1], [], []>} : vector<16x512xbf16>, vector<512x256xbf16>, vector<16x256xf32> -> vector<16x256xf32>
    %c0_10 = arith.constant 0 : index
    %c0_11 = arith.constant 0 : index
    %15 = vector.load %arg5[%c0_10, %c0_11] : memref<1x256xf32, #tpu.memory_space<vmem>>, vector<1x256xf32>
    %16 = vector.broadcast %15 : vector<1x256xf32> to vector<16x256xf32>
    %17 = arith.addf %14, %16 : vector<16x256xf32>
    %cst_12 = arith.constant 0.000000e+00 : f32
    %18 = vector.broadcast %cst_12 : f32 to vector<16x256xf32>
    %19 = arith.cmpf ogt, %17, %18 : vector<16x256xf32>
    %cst_13 = arith.constant 2.000000e-01 : f32
    %20 = vector.broadcast %cst_13 : f32 to vector<16x256xf32>
    %21 = arith.mulf %20, %17 : vector<16x256xf32>
    %22 = arith.select %19, %17, %21 : vector<16x256xi1>, vector<16x256xf32>
    %23 = arith.truncf %22 : vector<16x256xf32> to vector<16x256xbf16>
    %c0_14 = arith.constant 0 : index
    %c0_15 = arith.constant 0 : index
    %24 = vector.load %arg6[%c0_14, %c0_15] : memref<256x128xbf16, #tpu.memory_space<vmem>>, vector<256x128xbf16>
    %cst_16 = arith.constant dense<0.000000e+00> : vector<16x128xf32>
    %25 = tpu.matmul %23, %24, %cst_16 {dimension_numbers = #tpu.dot_dimension_numbers<[1], [0], [0], [1], [0, 0, 1, 1], [], []>} : vector<16x256xbf16>, vector<256x128xbf16>, vector<16x128xf32> -> vector<16x128xf32>
    %c0_17 = arith.constant 0 : index
    %c0_18 = arith.constant 0 : index
    %26 = vector.load %arg7[%c0_17, %c0_18] : memref<1x128xf32, #tpu.memory_space<vmem>>, vector<1x128xf32>
    %27 = vector.broadcast %26 : vector<1x128xf32> to vector<16x128xf32>
    %28 = arith.addf %25, %27 : vector<16x128xf32>
    %c0_19 = arith.constant 0 : index
    %c0_20 = arith.constant 0 : index
    %29 = vector.load %arg8[%c0_19, %c0_20] : memref<16x128xf32, #tpu.memory_space<vmem>>, vector<16x128xf32>
    tpu.vector_store %arg8[%c0_19, %c0_20], %28 {strides = array<i32>} : memref<16x128xf32, #tpu.memory_space<vmem>>, vector<16x128xf32>,
    return
  }
  func.func @transform_0(%arg0: i32) -> (i32, i32) {
    %c0_i32 = arith.constant 0 : i32
    %c0_i32_0 = arith.constant 0 : i32
    return %arg0, %c0_i32 : i32, i32
  }
  func.func @transform_1(%arg0: i32) -> (i32, i32) {
    %c0_i32 = arith.constant 0 : i32
    %c0_i32_0 = arith.constant 0 : i32
    %c0_i32_1 = arith.constant 0 : i32
    return %c0_i32, %c0_i32_0 : i32, i32
  }
  func.func @transform_2(%arg0: i32) -> (i32, i32) {
    %c0_i32 = arith.constant 0 : i32
    %c0_i32_0 = arith.constant 0 : i32
    %c0_i32_1 = arith.constant 0 : i32
    return %c0_i32, %c0_i32_0 : i32, i32
  }
  func.func @transform_3(%arg0: i32) -> (i32, i32) {
    %c0_i32 = arith.constant 0 : i32
    %c0_i32_0 = arith.constant 0 : i32
    %c0_i32_1 = arith.constant 0 : i32
    return %c0_i32, %c0_i32_0 : i32, i32
  }
  func.func @transform_4(%arg0: i32) -> (i32, i32) {
    %c0_i32 = arith.constant 0 : i32
    %c0_i32_0 = arith.constant 0 : i32
    %c0_i32_1 = arith.constant 0 : i32
    return %c0_i32, %c0_i32_0 : i32, i32
  }
  func.func @transform_5(%arg0: i32) -> (i32, i32) {
    %c0_i32 = arith.constant 0 : i32
    %c0_i32_0 = arith.constant 0 : i32
    %c0_i32_1 = arith.constant 0 : i32
    return %c0_i32, %c0_i32_0 : i32, i32
  }
  func.func @transform_6(%arg0: i32) -> (i32, i32) {
    %c0_i32 = arith.constant 0 : i32
    %c0_i32_0 = arith.constant 0 : i32
    %c0_i32_1 = arith.constant 0 : i32
    return %c0_i32, %c0_i32_0 : i32, i32
  }
  func.func @transform_7(%arg0: i32) -> (i32, i32) {
    %c0_i32 = arith.constant 0 : i32
    %c0_i32_0 = arith.constant 0 : i32
    return %arg0, %c0_i32 : i32, i32
  }
}

</mosaic_0001>

<bundles_post_ra>
// kernel: tpu_custom_call.1
= control target key start
LH: loop header
LB: loop body
LE: loop exit
PB: predicated region body
PF: predicated region fallthrough
CT: control target
= control target key end

     0   :  { %12 = vsyncpa [#allocation3], 0  ;;  %s2628_s0 = inlined_call_operand.hbm [shape: f32[16,512], index: 0, kind: input, shape index: {}]   ;;  %s2629_s1 = inlined_call_operand.hbm [shape: bf16[512,512], index: 1, kind: input, shape index: {}]   ;;  %s2630_s2 = inlined_call_operand.vmem [shape: f32[1,512], index: 2, kind: input, shape index: {}]   ;;  %s2631_s3 = inlined_call_operand.hbm [shape: bf16[512,256], index: 3, kind: input, shape index: {}]   ;;  %s2632_s4 = inlined_call_operand.vmem [shape: f32[1,256], index: 4, kind: input, shape index: {}]   ;;  %s2633_s5 = inlined_call_operand.hbm [shape: bf16[256,128], index: 5, kind: input, shape index: {}]   ;;  %s2634_s6 = inlined_call_operand.vmem [shape: f32[1,128], index: 6, kind: input, shape index: {}]   ;;  %s2635_s7 = inlined_call_operand.hbm [shape: f32[16,128], index: 7, kind: output, shape index: {}]  }
   0x1   :  { %13 = vsyncpa [#allocation6], 0 }
   0x2   :  { %14 = vsyncpa [#allocation9], 0 }
   0x3   :  { %15 = vsyncpa [#allocation4], 0  ;;  %s2468_s24 = smov [#allocation5]   ;;  %s2350_s28 = scalar_lea.hbm %s2629_s1, 16384 }
   0x4   :  { %s33_s25 = sshll.u32 %s2468_s24, 4  ;;  %p2351_p0 = scmp.ne.s32.totalorder %s2629_s1, %s2350_s28  ;;  %s34_s25 = int_to_ptr.vmem [resolvable:$true] %s33_s25 }
   0x5   :  { %p2354_p1 = scmp.lt.u32.totalorder %s2350_s28, %s2629_s1 }
   0x7   :  { %p2356_p2 = pnand %p2354_p1, %p2351_p0 }
   0x9   :  { %2359 = shalt.err (!%p2356_p2)
}
   0xa   :  { %s2360_s10 = scalar_lea.vmem %s34_s25, 16384  ;;  %p2365_p4 = scmp.lt.s32.totalorder %s34_s25, %s34_s25 }
   0xb   :  { %p2361_p3 = scmp.ne.s32.totalorder %s34_s25, %s2360_s10  ;;  %p2366_p5 = scmp.lt.s32.totalorder %s2360_s10, %s2360_s10 }
   0xd   :  { %p2367_p6 = por %p2366_p5, %p2365_p4 }
   0xf   :  { %p2368_p7 = pnand %p2367_p6, %p2361_p3 }
  0x11   :  { %2371 = shalt.err (!%p2368_p7)
}
  0x12   :  { %s2469_s11 = smov 256   ;;  %s2470_s12 = smov 16  }
  0x13   :  { %39 = dma.hbm_to_vmem [thread:$0]  %s2629_s1, 16384, %s34_s25, [#allocation6], %s2469_s11, %s2469_s11, %s2470_s12  }
  0x14   :  { %s2471_s15 = smov [#allocation2]   ;;  %s2372_s19 = scalar_lea.hbm %s2628_s0, 1024 }
  0x15   :  { %s21_s16 = sshll.u32 %s2471_s15, 4  ;;  %p2373_p8 = scmp.ne.s32.totalorder %s2628_s0, %s2372_s19  ;;  %s22_s16 = int_to_ptr.vmem [resolvable:$true] %s21_s16 }
  0x16   :  { %p2376_p9 = scmp.lt.u32.totalorder %s2372_s19, %s2628_s0 }
  0x18   :  { %p2378_p10 = pnand %p2376_p9, %p2373_p8 }
  0x1a   :  { %2381 = shalt.err (!%p2378_p10)
}
  0x1b   :  { %s2382_s24 = scalar_lea.vmem %s22_s16, 1024  ;;  %p2387_p12 = scmp.lt.s32.totalorder %s22_s16, %s22_s16 }
  0x1c   :  { %p2383_p11 = scmp.ne.s32.totalorder %s22_s16, %s2382_s24  ;;  %p2388_p13 = scmp.lt.s32.totalorder %s2382_s24, %s2382_s24 }
  0x1e   :  { %p2389_p0 = por %p2388_p13, %p2387_p12 }
  0x20   :  { %p2390_p1 = pnand %p2389_p0, %p2383_p11 }
  0x22   :  { %2393 = shalt.err (!%p2390_p1)
}
  0x23   :  { %s2472_s1 = smov 512   ;;  %s2473_s25 = smov 32  }
  0x24   :  { %27 = dma.hbm_to_vmem [thread:$0]  %s2628_s0, 1024, %s22_s16, [#allocation3], %s2472_s1, %s2472_s1, %s2473_s25  }
  0x25   :  { %s2474_s28 = smov [#allocation7]   ;;  %s2394_s9 = scalar_lea.hbm %s2631_s3, 8192 }
  0x26   :  { %s47_s29 = sshll.u32 %s2474_s28, 4  ;;  %p2395_p2 = scmp.ne.s32.totalorder %s2631_s3, %s2394_s9  ;;  %s48_s29 = int_to_ptr.vmem [resolvable:$true] %s47_s29 }
  0x27   :  { %p2398_p3 = scmp.lt.u32.totalorder %s2394_s9, %s2631_s3 }
  0x29   :  { %p2400_p4 = pnand %p2398_p3, %p2395_p2 }
  0x2b   :  { %2403 = shalt.err (!%p2400_p4)
}
  0x2c   :  { %s2404_s14 = scalar_lea.vmem %s48_s29, 8192  ;;  %p2409_p6 = scmp.lt.s32.totalorder %s48_s29, %s48_s29 }
  0x2d   :  { %p2405_p5 = scmp.ne.s32.totalorder %s48_s29, %s2404_s14  ;;  %p2410_p7 = scmp.lt.s32.totalorder %s2404_s14, %s2404_s14 }
  0x2f   :  { %p2411_p8 = por %p2410_p7, %p2409_p6 }
  0x31   :  { %p2412_p9 = pnand %p2411_p8, %p2405_p5 }
  0x33   :  { %2415 = shalt.err (!%p2412_p9)
}
  0x34   :  { %s2475_s0 = smov 128   ;;  %s2476_s15 = smov 8  }
  0x35   :  { %53 = dma.hbm_to_vmem [thread:$0]  %s2631_s3, 8192, %s48_s29, [#allocation6], %s2475_s0, %s2475_s0, %s2476_s15  }
  0x36   :  { %s2477_s18 = smov [#allocation8]   ;;  %s2416_s22 = scalar_lea.hbm %s2633_s5, 2048 }
  0x37   :  { %s61_s19 = sshll.u32 %s2477_s18, 4  ;;  %p2417_p10 = scmp.ne.s32.totalorder %s2633_s5, %s2416_s22  ;;  %s62_s19 = int_to_ptr.vmem [resolvable:$true] %s61_s19 }
  0x38   :  { %p2420_p11 = scmp.lt.u32.totalorder %s2416_s22, %s2633_s5 }
  0x3a   :  { %p2422_p12 = pnand %p2420_p11, %p2417_p10 }
  0x3c   :  { %2425 = shalt.err (!%p2422_p12)
}
  0x3d   :  { %s2426_s26 = scalar_lea.vmem %s62_s19, 2048  ;;  %p2431_p0 = scmp.lt.s32.totalorder %s62_s19, %s62_s19 }
  0x3e   :  { %p2427_p13 = scmp.ne.s32.totalorder %s62_s19, %s2426_s26  ;;  %p2432_p1 = scmp.lt.s32.totalorder %s2426_s26, %s2426_s26 }
  0x40   :  { %p2433_p2 = por %p2432_p1, %p2431_p0 }
  0x42   :  { %p2434_p3 = pnand %p2433_p2, %p2427_p13 }
  0x44   :  { %2437 = shalt.err (!%p2434_p3)
}
  0x45   :  { %s2478_s3 = smov 64   ;;  %s2479_s27 = smov 4  }
  0x46   :  { %67 = dma.hbm_to_vmem [thread:$0]  %s2633_s5, 2048, %s62_s19, [#allocation9], %s2478_s3, %s2478_s3, %s2479_s27  }
  0x47   :  { %2460 = dma.done.wait [#allocation3], 1024  }
  0x48   :  { %2461 = vsyncadd [#allocation3], 4294966272 }
  0x49   :  { %2462 = dma.done.wait [#allocation6], 24576  }
  0x4a   :  { %2463 = vsyncadd [#allocation6], 4294942720 }
  0x4b   :  { %2464 = dma.done.wait [#allocation9], 2048  }
  0x4c   :  { %2465 = vsyncadd [#allocation9], 4294965248  ;;  %v2046_v0 = vld [vmem:[#allocation5 + $0x4] ss:$16 sps:$4 sm:$0xff]   ;;  %v2048_v1 = vld [vmem:[#allocation5] ss:$16 sps:$4 sm:$0xff]  }
  0x4d   :  { %885 = vmatprep.subr.bf16.mxu1 %v2046_v0  ;;  %v2049_v2 = vld [vmem:[#allocation5 + $0x204] ss:$16 sps:$4 sm:$0xff]   ;;  %v2051_v3 = vld [vmem:[#allocation5 + $0x200] ss:$16 sps:$4 sm:$0xff]   ;;  %v84_v46 = vld [vmem:[#allocation2 + $0x8] sm:$0xff]  ;;  %s2480_s10 = smov [#allocation10]  }
  0x4e   :  { %886 = vmatpush1.bf16.msra.mxu1 %v2048_v1  ;;  %v2052_v4 = vld [vmem:[#allocation5 + $0x24] ss:$16 sps:$4 sm:$0xff]   ;;  %v2054_v5 = vld [vmem:[#allocation5 + $0x20] ss:$16 sps:$4 sm:$0xff]   ;;  %928 = vmatprep.subr.bf16.mxu0 %v2049_v2  ;;  %v88_v47 = vld [vmem:[#allocation2 + $0x28] sm:$0xff]  ;;  %s1764_s11 = sshll.u32 %s2480_s10, 4  ;;  %s1765_s11 = int_to_ptr.vmem [resolvable:$true] %s1764_s11 }
  0x4f   :  { %v2055_v6 = vld [vmem:[#allocation5 + $0x224] ss:$16 sps:$4 sm:$0xff]   ;;  %929 = vmatpush1.bf16.msra.mxu0 %v2051_v3  ;;  %887 = vmatprep.subr.bf16.mxu1 %v2052_v4  ;;  %v2057_v7 = vld [vmem:[#allocation5 + $0x220] ss:$16 sps:$4 sm:$0xff]   ;;  %v92_v49 = vpack.c.bf16 %v88_v47, %v84_v46  ;;  %v86_v52 = vld [vmem:[#allocation2 + $0x18] sm:$0xff]  ;;  %s2438_s12 = scalar_lea.vmem %s1765_s11, 256  ;;  %p2443_p5 = scmp.lt.s32.totalorder %s1765_s11, %s1765_s11 }
  0x50   :  { %930 = vmatprep.subr.bf16.mxu0 %v2055_v6  ;;  %v2058_v8 = vld [vmem:[#allocation5 + $0x44] ss:$16 sps:$4 sm:$0xff]   ;;  %v2060_v9 = vld [vmem:[#allocation5 + $0x40] ss:$16 sps:$4 sm:$0xff]   ;;  %v90_v53 = vld [vmem:[#allocation2 + $0x38] sm:$0xff]  ;;  %p2439_p4 = scmp.ne.s32.totalorder %s1765_s11, %s2438_s12  ;;  %p2444_p6 = scmp.lt.s32.totalorder %s2438_s12, %s2438_s12 }
  0x51   :  { %v2061_v10 = vld [vmem:[#allocation5 + $0x244] ss:$16 sps:$4 sm:$0xff]   ;;  %v2063_v12 = vld [vmem:[#allocation5 + $0x240] ss:$16 sps:$4 sm:$0xff]   ;;  %917 = vmatprep.mubr.bf16.mxu1 %v92_v49  ;;  %v2572_v55 = vpack.c.bf16 %v90_v53, %v86_v52  ;;  %v2180_v47 = vld [vmem:[#allocation5 + $0x18c] ss:$16 sps:$4 sm:$0xff]  }
  0x52   :  { %888 = vmatpush1.bf16.msra.mxu1 %v2054_v5  ;;  %v2064_v11 = vld [vmem:[#allocation5 + $0x64] ss:$16 sps:$4 sm:$0xff]   ;;  %v2066_v14 = vld [vmem:[#allocation5 + $0x60] ss:$16 sps:$4 sm:$0xff]   ;;  %p2445_p7 = por %p2444_p6, %p2443_p5 }
  0x53   :  { %889 = vmatprep.subr.bf16.mxu1 %v2058_v8  ;;  %931 = vmatpush1.bf16.msra.mxu0 %v2057_v7  ;;  %v2067_v13 = vld [vmem:[#allocation5 + $0x264] ss:$16 sps:$4 sm:$0xff]   ;;  %v2069_v16 = vld [vmem:[#allocation5 + $0x260] ss:$16 sps:$4 sm:$0xff]   ;;  %v2144_v8 = vld [vmem:[#allocation5 + $0xc] ss:$16 sps:$4 sm:$0xff]  }
  0x54   :  { %932 = vmatprep.subr.bf16.mxu0 %v2061_v10  ;;  %v2070_v15 = vld [vmem:[#allocation5 + $0x84] ss:$16 sps:$4 sm:$0xff]   ;;  %v2072_v18 = vld [vmem:[#allocation5 + $0x80] ss:$16 sps:$4 sm:$0xff]   ;;  %960 = vmatprep.mubr.bf16.mxu0 %v2572_v55  ;;  %p2446_p8 = pnand %p2445_p7, %p2439_p4 }
  0x55   :  { %v2073_v17 = vld [vmem:[#allocation5 + $0x284] ss:$16 sps:$4 sm:$0xff]   ;;  %v2075_v20 = vld [vmem:[#allocation5 + $0x280] ss:$16 sps:$4 sm:$0xff]  }
  0x56   :  { %890 = vmatpush1.bf16.msra.mxu1 %v2060_v9  ;;  %v2076_v19 = vld [vmem:[#allocation5 + $0xa4] ss:$16 sps:$4 sm:$0xff]   ;;  %v2078_v22 = vld [vmem:[#allocation5 + $0xa0] ss:$16 sps:$4 sm:$0xff]  }
  0x57   :  { %891 = vmatprep.subr.bf16.mxu1 %v2064_v11  ;;  %933 = vmatpush1.bf16.msra.mxu0 %v2063_v12  ;;  %v2079_v21 = vld [vmem:[#allocation5 + $0x2a4] ss:$16 sps:$4 sm:$0xff]   ;;  %v2081_v24 = vld [vmem:[#allocation5 + $0x2a0] ss:$16 sps:$4 sm:$0xff]   ;;  %v2142_v12 = vld [vmem:[#allocation5 + $0x8] ss:$16 sps:$4 sm:$0xff]  }
  0x58   :  { %934 = vmatprep.subr.bf16.mxu0 %v2067_v13  ;;  %v2082_v23 = vld [vmem:[#allocation5 + $0xc4] ss:$16 sps:$4 sm:$0xff]   ;;  %v2084_v26 = vld [vmem:[#allocation5 + $0xc0] ss:$16 sps:$4 sm:$0xff]  }
  0x59   :  { %v2085_v25 = vld [vmem:[#allocation5 + $0x2c4] ss:$16 sps:$4 sm:$0xff]   ;;  %v2087_v28 = vld [vmem:[#allocation5 + $0x2c0] ss:$16 sps:$4 sm:$0xff]  }
  0x5a   :  { %892 = vmatpush1.bf16.msra.mxu1 %v2066_v14  ;;  %v2088_v27 = vld [vmem:[#allocation5 + $0xe4] ss:$16 sps:$4 sm:$0xff]   ;;  %v2090_v30 = vld [vmem:[#allocation5 + $0xe0] ss:$16 sps:$4 sm:$0xff]   ;;  %v2147_v14 = vld [vmem:[#allocation5 + $0x2c] ss:$16 sps:$4 sm:$0xff]  }
  0x5b   :  { %893 = vmatprep.subr.bf16.mxu1 %v2070_v15  ;;  %935 = vmatpush1.bf16.msra.mxu0 %v2069_v16  ;;  %v2091_v29 = vld [vmem:[#allocation5 + $0x2e4] ss:$16 sps:$4 sm:$0xff]   ;;  %v2093_v32 = vld [vmem:[#allocation5 + $0x2e0] ss:$16 sps:$4 sm:$0xff]   ;;  %v2145_v15 = vld [vmem:[#allocation5 + $0x28] ss:$16 sps:$4 sm:$0xff]  }
  0x5c   :  { %936 = vmatprep.subr.bf16.mxu0 %v2073_v17  ;;  %v2094_v31 = vld [vmem:[#allocation5 + $0x104] ss:$16 sps:$4 sm:$0xff]   ;;  %v2096_v34 = vld [vmem:[#allocation5 + $0x100] ss:$16 sps:$4 sm:$0xff]   ;;  %v2150_v16 = vld [vmem:[#allocation5 + $0x4c] ss:$16 sps:$4 sm:$0xff]  }
  0x5d   :  { %v2097_v33 = vld [vmem:[#allocation5 + $0x304] ss:$16 sps:$4 sm:$0xff]   ;;  %v2099_v36 = vld [vmem:[#allocation5 + $0x300] ss:$16 sps:$4 sm:$0xff]   ;;  %v2148_v17 = vld [vmem:[#allocation5 + $0x48] ss:$16 sps:$4 sm:$0xff]  }
  0x5e   :  { %894 = vmatpush1.bf16.msra.mxu1 %v2072_v18  ;;  %v2100_v35 = vld [vmem:[#allocation5 + $0x124] ss:$16 sps:$4 sm:$0xff]   ;;  %v2102_v38 = vld [vmem:[#allocation5 + $0x120] ss:$16 sps:$4 sm:$0xff]   ;;  %v2153_v18 = vld [vmem:[#allocation5 + $0x6c] ss:$16 sps:$4 sm:$0xff]  }
  0x5f   :  { %895 = vmatprep.subr.bf16.mxu1 %v2076_v19  ;;  %937 = vmatpush1.bf16.msra.mxu0 %v2075_v20  ;;  %v2103_v37 = vld [vmem:[#allocation5 + $0x324] ss:$16 sps:$4 sm:$0xff]   ;;  %v2105_v40 = vld [vmem:[#allocation5 + $0x320] ss:$16 sps:$4 sm:$0xff]   ;;  %v2151_v19 = vld [vmem:[#allocation5 + $0x68] ss:$16 sps:$4 sm:$0xff]  }
  0x60   :  { %938 = vmatprep.subr.bf16.mxu0 %v2079_v21  ;;  %v2106_v39 = vld [vmem:[#allocation5 + $0x144] ss:$16 sps:$4 sm:$0xff]   ;;  %v2108_v42 = vld [vmem:[#allocation5 + $0x140] ss:$16 sps:$4 sm:$0xff]   ;;  %v2156_v20 = vld [vmem:[#allocation5 + $0x8c] ss:$16 sps:$4 sm:$0xff]  }
  0x61   :  { %v2109_v41 = vld [vmem:[#allocation5 + $0x344] ss:$16 sps:$4 sm:$0xff]   ;;  %v2111_v44 = vld [vmem:[#allocation5 + $0x340] ss:$16 sps:$4 sm:$0xff]   ;;  %v2154_v21 = vld [vmem:[#allocation5 + $0x88] ss:$16 sps:$4 sm:$0xff]  }
  0x62   :  { %896 = vmatpush1.bf16.msra.mxu1 %v2078_v22  ;;  %v2112_v43 = vld [vmem:[#allocation5 + $0x164] ss:$16 sps:$4 sm:$0xff]   ;;  %v2114_v48 = vld [vmem:[#allocation5 + $0x160] ss:$16 sps:$4 sm:$0xff]   ;;  %v2159_v22 = vld [vmem:[#allocation5 + $0xac] ss:$16 sps:$4 sm:$0xff]  }
  0x63   :  { %897 = vmatprep.subr.bf16.mxu1 %v2082_v23  ;;  %939 = vmatpush1.bf16.msra.mxu0 %v2081_v24  ;;  %v2115_v45 = vld [vmem:[#allocation5 + $0x364] ss:$16 sps:$4 sm:$0xff]   ;;  %v2117_v51 = vld [vmem:[#allocation5 + $0x360] ss:$16 sps:$4 sm:$0xff]   ;;  %v2157_v23 = vld [vmem:[#allocation5 + $0xa8] ss:$16 sps:$4 sm:$0xff]  }
  0x64   :  { %940 = vmatprep.subr.bf16.mxu0 %v2085_v25  ;;  %v2118_v50 = vld [vmem:[#allocation5 + $0x184] ss:$16 sps:$4 sm:$0xff]   ;;  %v2120_v56 = vld [vmem:[#allocation5 + $0x180] ss:$16 sps:$4 sm:$0xff]   ;;  %v2162_v24 = vld [vmem:[#allocation5 + $0xcc] ss:$16 sps:$4 sm:$0xff]  }
  0x65   :  { %v2121_v54 = vld [vmem:[#allocation5 + $0x384] ss:$16 sps:$4 sm:$0xff]   ;;  %v2123_v58 = vld [vmem:[#allocation5 + $0x380] ss:$16 sps:$4 sm:$0xff]   ;;  %v2160_v25 = vld [vmem:[#allocation5 + $0xc8] ss:$16 sps:$4 sm:$0xff]  }
  0x66   :  { %898 = vmatpush1.bf16.msra.mxu1 %v2084_v26  ;;  %v2124_v57 = vld [vmem:[#allocation5 + $0x1a4] ss:$16 sps:$4 sm:$0xff]   ;;  %v2126_v60 = vld [vmem:[#allocation5 + $0x1a0] ss:$16 sps:$4 sm:$0xff]   ;;  %v2165_v26 = vld [vmem:[#allocation5 + $0xec] ss:$16 sps:$4 sm:$0xff]  }
  0x67   :  { %899 = vmatprep.subr.bf16.mxu1 %v2088_v27  ;;  %941 = vmatpush1.bf16.msra.mxu0 %v2087_v28  ;;  %v2127_v59 = vld [vmem:[#allocation5 + $0x3a4] ss:$16 sps:$4 sm:$0xff]   ;;  %v2129_v62 = vld [vmem:[#allocation5 + $0x3a0] ss:$16 sps:$4 sm:$0xff]  }
  0x68   :  { %942 = vmatprep.subr.bf16.mxu0 %v2091_v29  ;;  %v2130_v61 = vld [vmem:[#allocation5 + $0x1c4] ss:$16 sps:$4 sm:$0xff]   ;;  %v2132_v0 = vld [vmem:[#allocation5 + $0x1c0] ss:$16 sps:$4 sm:$0xff]  }
  0x69   :  { %v2133_v63 = vld [vmem:[#allocation5 + $0x3c4] ss:$16 sps:$4 sm:$0xff]   ;;  %v2135_v1 = vld [vmem:[#allocation5 + $0x3c0] ss:$16 sps:$4 sm:$0xff]  }
  0x6a   :  { %900 = vmatpush1.bf16.msra.mxu1 %v2090_v30  ;;  %v2136_v2 = vld [vmem:[#allocation5 + $0x1e4] ss:$16 sps:$4 sm:$0xff]   ;;  %v2138_v3 = vld [vmem:[#allocation5 + $0x1e0] ss:$16 sps:$4 sm:$0xff]   ;;  %v2163_v30 = vld [vmem:[#allocation5 + $0xe8] ss:$16 sps:$4 sm:$0xff]  }
  0x6b   :  { %901 = vmatprep.subr.bf16.mxu1 %v2094_v31  ;;  %943 = vmatpush1.bf16.msra.mxu0 %v2093_v32  ;;  %v2139_v4 = vld [vmem:[#allocation5 + $0x3e4] ss:$16 sps:$4 sm:$0xff]   ;;  %v2141_v6 = vld [vmem:[#allocation5 + $0x3e0] ss:$16 sps:$4 sm:$0xff]   ;;  %v2168_v31 = vld [vmem:[#allocation5 + $0x10c] ss:$16 sps:$4 sm:$0xff]  }
  0x6c   :  { %944 = vmatprep.subr.bf16.mxu0 %v2097_v33  ;;  %v83_v5 = vld [vmem:[#allocation2] sm:$0xff]  ;;  %v85_v9 = vld [vmem:[#allocation2 + $0x10] sm:$0xff] }
  0x6d   :  { %v87_v7 = vld [vmem:[#allocation2 + $0x20] sm:$0xff]  ;;  %v89_v10 = vld [vmem:[#allocation2 + $0x30] sm:$0xff] }
  0x6e   :  { %902 = vmatpush1.bf16.msra.mxu1 %v2096_v34  ;;  %v2575_v11 = vpack.c.bf16 %v87_v7, %v83_v5  ;;  %v2577_v13 = vpack.c.bf16 %v89_v10, %v85_v9  ;;  %v2238_v27 = vld [vmem:[#allocation7] ss:$8 sps:$4 sm:$0xff]   ;;  %v2240_v28 = vld [vmem:[#allocation7 + $0x4] ss:$8 sps:$4 sm:$0xff]   ;;  %v2243_v29 = vld [vmem:[#allocation7 + $0x14] ss:$8 sps:$4 sm:$0xff]  }
  0x6f   :  { %903 = vmatprep.subr.bf16.mxu1 %v2100_v35  ;;  %945 = vmatpush1.bf16.msra.mxu0 %v2099_v36  ;;  %v2241_v32 = vld [vmem:[#allocation7 + $0x10] ss:$8 sps:$4 sm:$0xff]   ;;  %v2246_v33 = vld [vmem:[#allocation7 + $0x24] ss:$8 sps:$4 sm:$0xff]   ;;  %v2244_v36 = vld [vmem:[#allocation7 + $0x20] ss:$8 sps:$4 sm:$0xff]  }
  0x70   :  { %946 = vmatprep.subr.bf16.mxu0 %v2103_v37  ;;  %v2166_v34 = vld [vmem:[#allocation5 + $0x108] ss:$16 sps:$4 sm:$0xff]   ;;  %v2171_v35 = vld [vmem:[#allocation5 + $0x12c] ss:$16 sps:$4 sm:$0xff]  }
  0x71   :  { %v2249_v37 = vld [vmem:[#allocation7 + $0x34] ss:$8 sps:$4 sm:$0xff]   ;;  %v2256_v52 = vld [vmem:[#allocation7 + $0x60] ss:$8 sps:$4 sm:$0xff]   ;;  %v2271_v9 = vld [vmem:[#allocation7 + $0xb0] ss:$8 sps:$4 sm:$0xff]  }
  0x72   :  { %904 = vmatpush1.bf16.msra.mxu1 %v2102_v38  ;;  %v2169_v38 = vld [vmem:[#allocation5 + $0x128] ss:$16 sps:$4 sm:$0xff]   ;;  %v2255_v46 = vld [vmem:[#allocation7 + $0x54] ss:$8 sps:$4 sm:$0xff]   ;;  %v2276_v10 = vld [vmem:[#allocation7 + $0xc4] ss:$8 sps:$4 sm:$0xff]  }
  0x73   :  { %905 = vmatprep.subr.bf16.mxu1 %v2106_v39  ;;  %947 = vmatpush1.bf16.msra.mxu0 %v2105_v40  ;;  %v2174_v39 = vld [vmem:[#allocation5 + $0x14c] ss:$16 sps:$4 sm:$0xff]   ;;  %v2247_v40 = vld [vmem:[#allocation7 + $0x30] ss:$8 sps:$4 sm:$0xff]   ;;  %v2268_v5 = vld [vmem:[#allocation7 + $0xa0] ss:$8 sps:$4 sm:$0xff]  }
  0x74   :  { %948 = vmatprep.subr.bf16.mxu0 %v2109_v41  ;;  %v2252_v41 = vld [vmem:[#allocation7 + $0x44] ss:$8 sps:$4 sm:$0xff]   ;;  %v2261_v53 = vld [vmem:[#allocation7 + $0x74] ss:$8 sps:$4 sm:$0xff]   ;;  %v2193_v7 = vld [vmem:[#allocation5 + $0x228] ss:$16 sps:$4 sm:$0xff]  }
  0x76   :  { %906 = vmatpush1.bf16.msra.mxu1 %v2108_v42  ;;  %v2172_v42 = vld [vmem:[#allocation5 + $0x148] ss:$16 sps:$4 sm:$0xff]  }
  0x77   :  { %907 = vmatprep.subr.bf16.mxu1 %v2112_v43  ;;  %949 = vmatpush1.bf16.msra.mxu0 %v2111_v44  ;;  %v2177_v43 = vld [vmem:[#allocation5 + $0x16c] ss:$16 sps:$4 sm:$0xff]   ;;  %v2250_v44 = vld [vmem:[#allocation7 + $0x40] ss:$8 sps:$4 sm:$0xff]  }
  0x78   :  { %950 = vmatprep.subr.bf16.mxu0 %v2115_v45  ;;  %v2175_v45 = vld [vmem:[#allocation5 + $0x168] ss:$16 sps:$4 sm:$0xff]  }
  0x7a   :  { %908 = vmatpush1.bf16.msra.mxu1 %v2114_v48  ;;  %v2253_v48 = vld [vmem:[#allocation7 + $0x50] ss:$8 sps:$4 sm:$0xff]  }
  0x7b   :  { %909 = vmatprep.subr.bf16.mxu1 %v2118_v50  ;;  %951 = vmatpush1.bf16.msra.mxu0 %v2117_v51  ;;  %v2178_v50 = vld [vmem:[#allocation5 + $0x188] ss:$16 sps:$4 sm:$0xff]   ;;  %v2183_v51 = vld [vmem:[#allocation5 + $0x1ac] ss:$16 sps:$4 sm:$0xff]  }
  0x7c   :  { %952 = vmatprep.subr.bf16.mxu0 %v2121_v54  ;;  %v2181_v54 = vld [vmem:[#allocation5 + $0x1a8] ss:$16 sps:$4 sm:$0xff]  }
  0x7e   :  { %910 = vmatpush1.bf16.msra.mxu1 %v2120_v56  ;;  %v2186_v56 = vld [vmem:[#allocation5 + $0x1cc] ss:$16 sps:$4 sm:$0xff]  }
  0x7f   :  { %911 = vmatprep.subr.bf16.mxu1 %v2124_v57  ;;  %953 = vmatpush1.bf16.msra.mxu0 %v2123_v58  ;;  %v2259_v57 = vld [vmem:[#allocation7 + $0x70] ss:$8 sps:$4 sm:$0xff]   ;;  %v2264_v58 = vld [vmem:[#allocation7 + $0x84] ss:$8 sps:$4 sm:$0xff]  }
  0x80   :  { %954 = vmatprep.subr.bf16.mxu0 %v2127_v59  ;;  %v2184_v59 = vld [vmem:[#allocation5 + $0x1c8] ss:$16 sps:$4 sm:$0xff]  }
  0x82   :  { %912 = vmatpush1.bf16.msra.mxu1 %v2126_v60  ;;  %v2189_v60 = vld [vmem:[#allocation5 + $0x1ec] ss:$16 sps:$4 sm:$0xff]  }
  0x83   :  { %913 = vmatprep.subr.bf16.mxu1 %v2130_v61  ;;  %955 = vmatpush1.bf16.msra.mxu0 %v2129_v62  ;;  %v2262_v61 = vld [vmem:[#allocation7 + $0x80] ss:$8 sps:$4 sm:$0xff]   ;;  %v2267_v62 = vld [vmem:[#allocation7 + $0x94] ss:$8 sps:$4 sm:$0xff]  }
  0x84   :  { %956 = vmatprep.subr.bf16.mxu0 %v2133_v63  ;;  %v2187_v63 = vld [vmem:[#allocation5 + $0x1e8] ss:$16 sps:$4 sm:$0xff]  }
  0x86   :  { %914 = vmatpush1.bf16.msra.mxu1 %v2132_v0  ;;  %v2192_v0 = vld [vmem:[#allocation5 + $0x20c] ss:$16 sps:$4 sm:$0xff]  }
  0x87   :  { %915 = vmatprep.subr.bf16.mxu1 %v2136_v2  ;;  %957 = vmatpush1.bf16.msra.mxu0 %v2135_v1  ;;  %v2265_v1 = vld [vmem:[#allocation7 + $0x90] ss:$8 sps:$4 sm:$0xff]   ;;  %v2270_v2 = vld [vmem:[#allocation7 + $0xa4] ss:$8 sps:$4 sm:$0xff]  }
  0x88   :  { %958 = vmatprep.subr.bf16.mxu0 %v2139_v4  ;;  %v2195_v4 = vld [vmem:[#allocation5 + $0x22c] ss:$16 sps:$4 sm:$0xff]  }
  0x8a   :  { %916 = vmatpush1.bf16.msra.mxu1 %v2138_v3  ;;  %v2190_v3 = vld [vmem:[#allocation5 + $0x208] ss:$16 sps:$4 sm:$0xff]  }
  0x8b   :  { %971 = vmatprep.subr.bf16.mxu1 %v2144_v8  ;;  %959 = vmatpush1.bf16.msra.mxu0 %v2141_v6  ;;  %v2273_v6 = vld [vmem:[#allocation7 + $0xb4] ss:$8 sps:$4 sm:$0xff]  }
  0x8c   :  { %1481 = vmatprep.subr.bf16.mxu0 %v2240_v28  ;;  %v2198_v8 = vld [vmem:[#allocation5 + $0x24c] ss:$16 sps:$4 sm:$0xff]  }
  0x8d   :  { %918 = vmatmul.mubr.bf16.vlgmr.msra.gmra.mrb[0].mxu1 %v2575_v11  ;;  %v2285_v28 = vld [vmem:[#allocation7 + $0xf4] ss:$8 sps:$4 sm:$0xff]  }
  0x8e   :  { %972 = vmatpush1.bf16.msra.mxu1 %v2142_v12  ;;  %1003 = vmatprep.mubr.bf16.mxu1 %v92_v49  ;;  %v2258_v49 = vld [vmem:[#allocation7 + $0x64] ss:$8 sps:$4 sm:$0xff]   ;;  %v2196_v12 = vld [vmem:[#allocation5 + $0x248] ss:$16 sps:$4 sm:$0xff]  }
  0x8f   :  { %961 = vmatmul.mubr.bf16.vlgmr.msra.gmra.mrb[0].mxu0 %v2577_v13  ;;  %973 = vmatprep.subr.bf16.mxu1 %v2147_v14  ;;  %v2201_v14 = vld [vmem:[#allocation5 + $0x26c] ss:$16 sps:$4 sm:$0xff]  }
  0x90   :  { %1482 = vmatpush1.bf16.msra.mxu0 %v2238_v27  ;;  %v2216_v27 = vld [vmem:[#allocation5 + $0x30c] ss:$16 sps:$4 sm:$0xff]  }
  0x91   :  { %1483 = vmatprep.subr.bf16.mxu0 %v2243_v29  ;;  %v2283_v29 = vld [vmem:[#allocation7 + $0xf0] ss:$8 sps:$4 sm:$0xff]  }
  0x92   :  { %974 = vmatpush1.bf16.msra.mxu1 %v2145_v15  ;;  %v2274_v15 = vld [vmem:[#allocation7 + $0xc0] ss:$8 sps:$4 sm:$0xff]  }
  0x93   :  { %975 = vmatprep.subr.bf16.mxu1 %v2150_v16  ;;  %v2199_v16 = vld [vmem:[#allocation5 + $0x268] ss:$16 sps:$4 sm:$0xff]  }
  0x94   :  { %1484 = vmatpush1.bf16.msra.mxu0 %v2241_v32  ;;  %v2217_v32 = vld [vmem:[#allocation5 + $0x328] ss:$16 sps:$4 sm:$0xff]  }
  0x95   :  { %1485 = vmatprep.subr.bf16.mxu0 %v2246_v33  ;;  %v2288_v33 = vld [vmem:[#allocation7 + $0x104] ss:$8 sps:$4 sm:$0xff]  }
  0x96   :  { %976 = vmatpush1.bf16.msra.mxu1 %v2148_v17  ;;  %v2207_v17 = vld [vmem:[#allocation5 + $0x2ac] ss:$16 sps:$4 sm:$0xff]  }
  0x97   :  { %977 = vmatprep.subr.bf16.mxu1 %v2153_v18  ;;  %v2205_v18 = vld [vmem:[#allocation5 + $0x2a8] ss:$16 sps:$4 sm:$0xff]  }
  0x98   :  { %1486 = vmatpush1.bf16.msra.mxu0 %v2244_v36  ;;  %v2225_v36 = vld [vmem:[#allocation5 + $0x36c] ss:$16 sps:$4 sm:$0xff]  }
  0x99   :  { %1487 = vmatprep.subr.bf16.mxu0 %v2249_v37  ;;  %v2223_v37 = vld [vmem:[#allocation5 + $0x368] ss:$16 sps:$4 sm:$0xff]  }
  0x9a   :  { %978 = vmatpush1.bf16.msra.mxu1 %v2151_v19  ;;  %v2210_v19 = vld [vmem:[#allocation5 + $0x2cc] ss:$16 sps:$4 sm:$0xff]  }
  0x9b   :  { %979 = vmatprep.subr.bf16.mxu1 %v2156_v20  ;;  %v2279_v20 = vld [vmem:[#allocation7 + $0xd4] ss:$8 sps:$4 sm:$0xff]  }
  0x9c   :  { %1488 = vmatpush1.bf16.msra.mxu0 %v2247_v40  ;;  %v2231_v40 = vld [vmem:[#allocation5 + $0x3ac] ss:$16 sps:$4 sm:$0xff]  }
  0x9d   :  { %1489 = vmatprep.subr.bf16.mxu0 %v2252_v41  ;;  %v2229_v41 = vld [vmem:[#allocation5 + $0x3a8] ss:$16 sps:$4 sm:$0xff]  }
  0x9e   :  { %980 = vmatpush1.bf16.msra.mxu1 %v2154_v21  ;;  %v2277_v21 = vld [vmem:[#allocation7 + $0xd0] ss:$8 sps:$4 sm:$0xff]  }
  0x9f   :  { %981 = vmatprep.subr.bf16.mxu1 %v2159_v22  ;;  %v2208_v22 = vld [vmem:[#allocation5 + $0x2c8] ss:$16 sps:$4 sm:$0xff]  }
  0xa0   :  { %1490 = vmatpush1.bf16.msra.mxu0 %v2250_v44  ;;  %v2237_v44 = vld [vmem:[#allocation5 + $0x3ec] ss:$16 sps:$4 sm:$0xff]  }
  0xa1   :  { %1491 = vmatprep.subr.bf16.mxu0 %v2255_v46  ;;  %v225_v46 = vlaneseq }
  0xa2   :  { %982 = vmatpush1.bf16.msra.mxu1 %v2157_v23  ;;  %v2213_v23 = vld [vmem:[#allocation5 + $0x2ec] ss:$16 sps:$4 sm:$0xff]  }
  0xa3   :  { %983 = vmatprep.subr.bf16.mxu1 %v2162_v24  ;;  %v2282_v24 = vld [vmem:[#allocation7 + $0xe4] ss:$8 sps:$4 sm:$0xff]  }
  0xa4   :  { %1492 = vmatpush1.bf16.msra.mxu0 %v2253_v48 }
  0xa5   :  { %1493 = vmatprep.subr.bf16.mxu0 %v2258_v49  ;;  %v2590_v49 = vld [vmem:[%s2630_s2] sm:$0xf] }
  0xa6   :  { %984 = vmatpush1.bf16.msra.mxu1 %v2160_v25  ;;  %v2280_v25 = vld [vmem:[#allocation7 + $0xe0] ss:$8 sps:$4 sm:$0xff]  }
  0xa7   :  { %985 = vmatprep.subr.bf16.mxu1 %v2165_v26  ;;  %v2211_v26 = vld [vmem:[#allocation5 + $0x2e8] ss:$16 sps:$4 sm:$0xff]  }
  0xa8   :  { %1494 = vmatpush1.bf16.msra.mxu0 %v2256_v52 }
  0xa9   :  { %1495 = vmatprep.subr.bf16.mxu0 %v2261_v53 }
  0xaa   :  { %986 = vmatpush1.bf16.msra.mxu1 %v2163_v30  ;;  %v2214_v30 = vld [vmem:[#allocation5 + $0x308] ss:$16 sps:$4 sm:$0xff]  }
  0xab   :  { %987 = vmatprep.subr.bf16.mxu1 %v2168_v31  ;;  %v2219_v31 = vld [vmem:[#allocation5 + $0x32c] ss:$16 sps:$4 sm:$0xff]  }
  0xac   :  { %1496 = vmatpush1.bf16.msra.mxu0 %v2259_v57 }
  0xad   :  { %1497 = vmatprep.subr.bf16.mxu0 %v2264_v58 }
  0xae   :  { %988 = vmatpush1.bf16.msra.mxu1 %v2166_v34  ;;  %v2222_v34 = vld [vmem:[#allocation5 + $0x34c] ss:$16 sps:$4 sm:$0xff]  }
  0xaf   :  { %989 = vmatprep.subr.bf16.mxu1 %v2171_v35  ;;  %v2220_v35 = vld [vmem:[#allocation5 + $0x348] ss:$16 sps:$4 sm:$0xff]  }
  0xb0   :  { %1498 = vmatpush1.bf16.msra.mxu0 %v2262_v61 }
  0xb1   :  { %1499 = vmatprep.subr.bf16.mxu0 %v2267_v62 }
  0xb2   :  { %990 = vmatpush1.bf16.msra.mxu1 %v2169_v38  ;;  %v2228_v38 = vld [vmem:[#allocation5 + $0x38c] ss:$16 sps:$4 sm:$0xff]  }
  0xb3   :  { %991 = vmatprep.subr.bf16.mxu1 %v2174_v39  ;;  %v2226_v39 = vld [vmem:[#allocation5 + $0x388] ss:$16 sps:$4 sm:$0xff]  }
  0xb4   :  { %1500 = vmatpush1.bf16.msra.mxu0 %v2265_v1 }
  0xb5   :  { %1501 = vmatprep.subr.bf16.mxu0 %v2270_v2 }
  0xb6   :  { %992 = vmatpush1.bf16.msra.mxu1 %v2172_v42  ;;  %v2234_v42 = vld [vmem:[#allocation5 + $0x3cc] ss:$16 sps:$4 sm:$0xff]  }
  0xb7   :  { %993 = vmatprep.subr.bf16.mxu1 %v2177_v43  ;;  %v2232_v43 = vld [vmem:[#allocation5 + $0x3c8] ss:$16 sps:$4 sm:$0xff]  }
  0xb8   :  { %1502 = vmatpush1.bf16.msra.mxu0 %v2268_v5 }
  0xb9   :  { %1503 = vmatprep.subr.bf16.mxu0 %v2273_v6 }
  0xba   :  { %994 = vmatpush1.bf16.msra.mxu1 %v2175_v45  ;;  %v2235_v45 = vld [vmem:[#allocation5 + $0x3e8] ss:$16 sps:$4 sm:$0xff]  }
  0xbb   :  { %995 = vmatprep.subr.bf16.mxu1 %v2180_v47  ;;  %v2584_v47 = vshrl.u32 %v225_v46, 7  ;;  %v2321_v46 = vld [vmem:[#allocation7 + $0x1b4] ss:$8 sps:$4 sm:$0xff]  }
  0xbc   :  { %1504 = vmatpush1.bf16.msra.mxu0 %v2271_v9 }
  0xbd   :  { %1505 = vmatprep.subr.bf16.mxu0 %v2276_v10  ;;  %v227_v48 = vsub.s32 0, %v2584_v47 }
  0xbe   :  { %996 = vmatpush1.bf16.msra.mxu1 %v2178_v50  ;;  %v231_v50 = vsub.s32 1, %v2584_v47 }
  0xbf   :  { %997 = vmatprep.subr.bf16.mxu1 %v2183_v51  ;;  %v228_v51 = vrot.slane %v2590_v49, %v227_v48 }
  0xc0   :  { %1506 = vmatpush1.bf16.msra.mxu0 %v2274_v15 }
  0xc1   :  { %1507 = vmatprep.subr.bf16.mxu0 %v2279_v20  ;;  %v2289_v20 = vld [vmem:[#allocation7 + $0x110] ss:$8 sps:$4 sm:$0xff]  }
  0xc2   :  { %998 = vmatpush1.bf16.msra.mxu1 %v2181_v54 }
  0xc3   :  { %999 = vmatprep.subr.bf16.mxu1 %v2186_v56 }
  0xc4   :  { %1508 = vmatpush1.bf16.msra.mxu0 %v2277_v21  ;;  %v2337_v21 = vld [vmem:[#allocation8 + $0x8] sm:$0xff]  }
  0xc5   :  { %1509 = vmatprep.subr.bf16.mxu0 %v2282_v24  ;;  %v2292_v24 = vld [vmem:[#allocation7 + $0x120] ss:$8 sps:$4 sm:$0xff]  }
  0xc6   :  { %1000 = vmatpush1.bf16.msra.mxu1 %v2184_v59 }
  0xc7   :  { %1001 = vmatprep.subr.bf16.mxu1 %v2189_v60 }
  0xc8   :  { %1510 = vmatpush1.bf16.msra.mxu0 %v2280_v25  ;;  %v2339_v25 = vld [vmem:[#allocation8 + $0x10] sm:$0xff]  }
  0xc9   :  { %1511 = vmatprep.subr.bf16.mxu0 %v2285_v28  ;;  %v2295_v28 = vld [vmem:[#allocation7 + $0x130] ss:$8 sps:$4 sm:$0xff]  }
  0xca   :  { %1002 = vmatpush1.bf16.msra.mxu1 %v2187_v63 }
  0xcb   :  { %1014 = vmatprep.subr.bf16.mxu1 %v2192_v0 }
  0xcc   :  { %1512 = vmatpush1.bf16.msra.mxu0 %v2283_v29  ;;  %v2341_v29 = vld [vmem:[#allocation8 + $0x18] sm:$0xff]  }
  0xcd   :  { %1004 = vmatmul.mubr.bf16.vlgmr.msra.gmra.mrb[4].mxu1 %v2575_v11  ;;  %v2204_v11 = vld [vmem:[#allocation5 + $0x28c] ss:$16 sps:$4 sm:$0xff]   ;;  %1524 = vmatprep.subr.bf16.mxu0 %v2288_v33  ;;  %v2343_v33 = vld [vmem:[#allocation8 + $0x20] sm:$0xff]  }
  0xce   :  { %1015 = vmatpush1.bf16.msra.mxu1 %v2190_v3  ;;  %1046 = vmatprep.mubr.bf16.mxu1 %v2572_v55  ;;  %v2202_v55 = vld [vmem:[#allocation5 + $0x288] ss:$16 sps:$4 sm:$0xff]  }
  0xcf   :  { %1016 = vmatprep.subr.bf16.mxu1 %v2195_v4 }
  0xd2   :  { %1017 = vmatpush1.bf16.msra.mxu1 %v2193_v7 }
  0xd3   :  { %1018 = vmatprep.subr.bf16.mxu1 %v2198_v8 }
  0xd6   :  { %1019 = vmatpush1.bf16.msra.mxu1 %v2196_v12 }
  0xd7   :  { %1020 = vmatprep.subr.bf16.mxu1 %v2201_v14 }
  0xda   :  { %1021 = vmatpush1.bf16.msra.mxu1 %v2199_v16 }
  0xdb   :  { %1022 = vmatprep.subr.bf16.mxu1 %v2204_v11  ;;  %v2286_v11 = vld [vmem:[#allocation7 + $0x100] ss:$8 sps:$4 sm:$0xff]  }
  0xde   :  { %1023 = vmatpush1.bf16.msra.mxu1 %v2202_v55  ;;  %v2291_v55 = vld [vmem:[#allocation7 + $0x114] ss:$8 sps:$4 sm:$0xff]  }
  0xdf   :  { %1024 = vmatprep.subr.bf16.mxu1 %v2207_v17  ;;  %v2334_v17 = vld [vmem:[#allocation8 + $0x40] sm:$0xff]  }
  0xe2   :  { %1025 = vmatpush1.bf16.msra.mxu1 %v2205_v18  ;;  %v2335_v18 = vld [vmem:[#allocation8] sm:$0xff]  }
  0xe3   :  { %1026 = vmatprep.subr.bf16.mxu1 %v2210_v19  ;;  %v2336_v19 = vld [vmem:[#allocation8 + $0x48] sm:$0xff]  }
  0xe6   :  { %1027 = vmatpush1.bf16.msra.mxu1 %v2208_v22  ;;  %v2294_v22 = vld [vmem:[#allocation7 + $0x124] ss:$8 sps:$4 sm:$0xff]  }
  0xe7   :  { %1028 = vmatprep.subr.bf16.mxu1 %v2213_v23  ;;  %v2338_v23 = vld [vmem:[#allocation8 + $0x50] sm:$0xff]  }
  0xea   :  { %1029 = vmatpush1.bf16.msra.mxu1 %v2211_v26  ;;  %v2297_v26 = vld [vmem:[#allocation7 + $0x134] ss:$8 sps:$4 sm:$0xff]  }
  0xeb   :  { %1030 = vmatprep.subr.bf16.mxu1 %v2216_v27  ;;  %v2340_v27 = vld [vmem:[#allocation8 + $0x58] sm:$0xff]  }
  0xee   :  { %1031 = vmatpush1.bf16.msra.mxu1 %v2214_v30  ;;  %v2300_v30 = vld [vmem:[#allocation7 + $0x144] ss:$8 sps:$4 sm:$0xff]  }
  0xef   :  { %1032 = vmatprep.subr.bf16.mxu1 %v2219_v31  ;;  %v2342_v31 = vld [vmem:[#allocation8 + $0x60] sm:$0xff]  }
  0xf2   :  { %1033 = vmatpush1.bf16.msra.mxu1 %v2217_v32  ;;  %v2298_v32 = vld [vmem:[#allocation7 + $0x140] ss:$8 sps:$4 sm:$0xff]  }
  0xf3   :  { %1034 = vmatprep.subr.bf16.mxu1 %v2222_v34  ;;  %v2303_v34 = vld [vmem:[#allocation7 + $0x154] ss:$8 sps:$4 sm:$0xff]  }
  0xf6   :  { %1035 = vmatpush1.bf16.msra.mxu1 %v2220_v35  ;;  %v2301_v35 = vld [vmem:[#allocation7 + $0x150] ss:$8 sps:$4 sm:$0xff]  }
  0xf7   :  { %1036 = vmatprep.subr.bf16.mxu1 %v2225_v36  ;;  %v2306_v36 = vld [vmem:[#allocation7 + $0x164] ss:$8 sps:$4 sm:$0xff]  }
  0xfa   :  { %1037 = vmatpush1.bf16.msra.mxu1 %v2223_v37  ;;  %v2304_v37 = vld [vmem:[#allocation7 + $0x160] ss:$8 sps:$4 sm:$0xff]  }
  0xfb   :  { %1038 = vmatprep.subr.bf16.mxu1 %v2228_v38  ;;  %v2309_v38 = vld [vmem:[#allocation7 + $0x174] ss:$8 sps:$4 sm:$0xff]  }
  0xfe   :  { %1039 = vmatpush1.bf16.msra.mxu1 %v2226_v39  ;;  %v2307_v39 = vld [vmem:[#allocation7 + $0x170] ss:$8 sps:$4 sm:$0xff]  }
  0xff   :  { %1040 = vmatprep.subr.bf16.mxu1 %v2231_v40  ;;  %v2312_v40 = vld [vmem:[#allocation7 + $0x184] ss:$8 sps:$4 sm:$0xff]  }
 0x102   :  { %1041 = vmatpush1.bf16.msra.mxu1 %v2229_v41  ;;  %v2310_v41 = vld [vmem:[#allocation7 + $0x180] ss:$8 sps:$4 sm:$0xff]  }
 0x103   :  { %1042 = vmatprep.subr.bf16.mxu1 %v2234_v42  ;;  %v2315_v42 = vld [vmem:[#allocation7 + $0x194] ss:$8 sps:$4 sm:$0xff]  }
 0x106   :  { %1043 = vmatpush1.bf16.msra.mxu1 %v2232_v43  ;;  %v2313_v43 = vld [vmem:[#allocation7 + $0x190] ss:$8 sps:$4 sm:$0xff]  }
 0x107   :  { %1044 = vmatprep.subr.bf16.mxu1 %v2237_v44  ;;  %v2318_v44 = vld [vmem:[#allocation7 + $0x1a4] ss:$8 sps:$4 sm:$0xff]  }
 0x10a   :  { %1045 = vmatpush1.bf16.msra.mxu1 %v2235_v45  ;;  %v2316_v45 = vld [vmem:[#allocation7 + $0x1a0] ss:$8 sps:$4 sm:$0xff]  }
 0x10b   :  { %1987 = vmatprep.subr.bf16.mxu1 %v2334_v17  ;;  %v2344_v17 = vld [vmem:[#allocation8 + $0x68] sm:$0xff]  }
 0x10d   :  { %1047 = vmatmul.mubr.bf16.vlgmr.msra.gmra.mrb[4].mxu1 %v2577_v13  ;;  %v232_v13 = vrot.slane %v2590_v49, %v231_v50 }
 0x10e   :  { %1988 = vmatpush3.bf16.msra.mxu1 %v2335_v18  ;;  %v2345_v18 = vld [vmem:[#allocation8 + $0x28] sm:$0xff]  }
 0x10f   :  { %1989 = vmatprep.subr.bf16.mxu1 %v2336_v19  ;;  %v2346_v19 = vld [vmem:[#allocation8 + $0x70] sm:$0xff]  }
 0x112   :  { %1990 = vmatpush3.bf16.msra.mxu1 %v2337_v21  ;;  %v2348_v21 = vld [vmem:[#allocation8 + $0x78] sm:$0xff]  }
 0x113   :  { %1991 = vmatprep.subr.bf16.mxu1 %v2338_v23  ;;  %v1149_v23 = vld [vmem:[%s2632_s4] sm:$0x3] }
 0x116   :  { %1992 = vmatpush3.bf16.msra.mxu1 %v2339_v25  ;;  %v1158_v25 = vrot.slane %v1149_v23, %v231_v50 }
 0x117   :  { %1993 = vmatprep.subr.bf16.mxu1 %v2340_v27 }
 0x11a   :  { %1994 = vmatpush3.bf16.msra.mxu1 %v2341_v29 }
 0x11b   :  { %1995 = vmatprep.subr.bf16.mxu1 %v2342_v31 }
 0x11e   :  { %1996 = vmatpush3.bf16.msra.mxu1 %v2343_v33 }
 0x11f   :  { %1997 = vmatprep.subr.bf16.mxu1 %v2344_v17 }
 0x122   :  { %1998 = vmatpush3.bf16.msra.mxu1 %v2345_v18 }
 0x123   :  { %1999 = vmatprep.subr.bf16.mxu1 %v2346_v19 }
 0x160   :  { %v919_v52 = vpop.f32.mrb[0].mxu1 }
 0x161   :  { %v920_v53 = vadd.f32 %v919_v52, %v228_v51  ;;  %v921_v54 = vpop.f32.mrb[1].mxu1  ;;  %v2322_v52 = vld [vmem:[#allocation7 + $0x1c0] ss:$8 sps:$4 sm:$0xff]  }
 0x162   :  { %v922_v56 = vadd.f32 %v921_v54, %v232_v13  ;;  %v923_v57 = vpop.f32.mrb[2].mxu1  ;;  %v962_v58 = vpop.f32.mrb[0].mxu0  ;;  %v2325_v54 = vld [vmem:[#allocation7 + $0x1d0] ss:$8 sps:$4 sm:$0xff]  }
 0x163   :  { %v924_v59 = vadd.f32 %v923_v57, %v228_v51  ;;  %v963_v60 = vadd.f32 %v962_v58, %v920_v53  ;;  %v925_v61 = vpop.f32.mrb[3].mxu1  ;;  %v964_v62 = vpop.f32.mrb[1].mxu0  ;;  %v2319_v51 = vld [vmem:[#allocation7 + $0x1b0] ss:$8 sps:$4 sm:$0xff]   ;;  %v2327_v53 = vld [vmem:[#allocation7 + $0x1d4] ss:$8 sps:$4 sm:$0xff]  }
 0x164   :  { %v926_v63 = vadd.f32 %v925_v61, %v232_v13  ;;  %v965_v0 = vadd.f32 %v964_v62, %v922_v56  ;;  %v966_v1 = vpop.f32.mrb[2].mxu0  ;;  %v2324_v13 = vld [vmem:[#allocation7 + $0x1c4] ss:$8 sps:$4 sm:$0xff]   ;;  %v2328_v57 = vld [vmem:[#allocation7 + $0x1e0] ss:$8 sps:$4 sm:$0xff]   ;;  %v239_v61 = vsub.s32 3, %v2584_v47 }
 0x165   :  { %v1065_v2 = vmul.f32 0.2, %v963_v60  ;;  %v967_v3 = vadd.f32 %v966_v1, %v924_v59  ;;  %v968_v4 = vpop.f32.mrb[3].mxu0  ;;  %vm1057_vm0 = vcmp.gt.f32.partialorder %v963_v60, 0.0  ;;  %v2330_v56 = vld [vmem:[#allocation7 + $0x1e4] ss:$8 sps:$4 sm:$0xff]  }
 0x166   :  { %v1066_v5 = vmul.f32 0.2, %v965_v0  ;;  %v969_v6 = vadd.f32 %v968_v4, %v926_v63  ;;  %vm1058_vm1 = vcmp.gt.f32.partialorder %v965_v0, 0.0  ;;  %v2333_v58 = vld [vmem:[#allocation7 + $0x1f4] ss:$8 sps:$4 sm:$0xff]   ;;  %v240_v63 = vrot.slane %v2590_v49, %v239_v61 }
 0x167   :  { %vm1061_vm2 = vcmp.gt.f32.partialorder %v967_v3, 0.0  ;;  %v1069_v7 = vmul.f32 0.2, %v967_v3  ;;  %v1073_v9 = vsel %vm1057_vm0, %v963_v60, %v1065_v2  ;;  %v2331_v59 = vld [vmem:[#allocation7 + $0x1f0] ss:$8 sps:$4 sm:$0xff]   ;;  %v235_v60 = vsub.s32 2, %v2584_v47 }
 0x168   :  { %vm1062_vm3 = vcmp.gt.f32.partialorder %v969_v6, 0.0  ;;  %v1070_v8 = vmul.f32 0.2, %v969_v6  ;;  %v1074_v14 = vsel %vm1058_vm1, %v965_v0, %v1066_v5 }
 0x169   :  { %v1077_v10 = vsel %vm1061_vm2, %v967_v3, %v1069_v7  ;;  %v236_v62 = vrot.slane %v2590_v49, %v235_v60 }
 0x16a   :  { %v1081_v12 = vpack.c.bf16 %v1077_v10, %v1073_v9  ;;  %v1078_v15 = vsel %vm1062_vm3, %v969_v6, %v1070_v8 }
 0x16b   :  { %v1082_v16 = vpack.c.bf16 %v1078_v15, %v1074_v14 }
 0x16d   :  { %1513 = vmatprep.mubr.bf16.mxu0 %v1082_v16 }
 0x16e   :  { %1514 = vmatmul.mubr.bf16.vlgmr.msra.gmra.mrb[4].mxu0 %v1081_v12 }
 0x16f   :  { %1525 = vmatpush1.bf16.msra.mxu0 %v2286_v11 }
 0x170   :  { %1526 = vmatprep.subr.bf16.mxu0 %v2291_v55 }
 0x173   :  { %1527 = vmatpush1.bf16.msra.mxu0 %v2289_v20  ;;  %v2347_v20 = vld [vmem:[#allocation8 + $0x30] sm:$0xff]  }
 0x174   :  { %1528 = vmatprep.subr.bf16.mxu0 %v2294_v22  ;;  %2000 = vmatpush3.bf16.msra.mxu1 %v2347_v20  ;;  %v2349_v22 = vld [vmem:[#allocation8 + $0x38] sm:$0xff]  }
 0x175   :  { %2001 = vmatprep.subr.bf16.mxu1 %v2348_v21 }
 0x177   :  { %1529 = vmatpush1.bf16.msra.mxu0 %v2292_v24  ;;  %v1154_v24 = vrot.slane %v1149_v23, %v227_v48 }
 0x178   :  { %1530 = vmatprep.subr.bf16.mxu0 %v2297_v26  ;;  %2002 = vmatpush3.bf16.msra.mxu1 %v2349_v22 }
 0x17b   :  { %1531 = vmatpush1.bf16.msra.mxu0 %v2295_v28 }
 0x17c   :  { %1532 = vmatprep.subr.bf16.mxu0 %v2300_v30 }
 0x17f   :  { %1533 = vmatpush1.bf16.msra.mxu0 %v2298_v32 }
 0x180   :  { %1534 = vmatprep.subr.bf16.mxu0 %v2303_v34 }
 0x183   :  { %1535 = vmatpush1.bf16.msra.mxu0 %v2301_v35 }
 0x184   :  { %1536 = vmatprep.subr.bf16.mxu0 %v2306_v36 }
 0x187   :  { %1537 = vmatpush1.bf16.msra.mxu0 %v2304_v37 }
 0x188   :  { %1538 = vmatprep.subr.bf16.mxu0 %v2309_v38 }
 0x18b   :  { %1539 = vmatpush1.bf16.msra.mxu0 %v2307_v39 }
 0x18c   :  { %1540 = vmatprep.subr.bf16.mxu0 %v2312_v40 }
 0x18f   :  { %1541 = vmatpush1.bf16.msra.mxu0 %v2310_v41 }
 0x190   :  { %1542 = vmatprep.subr.bf16.mxu0 %v2315_v42  ;;  %v1970_v42 = vld [vmem:[%s2634_s6] ss:$0 sm:$0xff] }
 0x193   :  { %1543 = vmatpush1.bf16.msra.mxu0 %v2313_v43 }
 0x194   :  { %1544 = vmatprep.subr.bf16.mxu0 %v2318_v44 }
 0x197   :  { %1545 = vmatpush1.bf16.msra.mxu0 %v2316_v45 }
 0x198   :  { %1546 = vmatprep.subr.bf16.mxu0 %v2321_v46 }
 0x19b   :  { %1547 = vmatpush1.bf16.msra.mxu0 %v2319_v51 }
 0x19c   :  { %1548 = vmatprep.subr.bf16.mxu0 %v2324_v13 }
 0x19f   :  { %1549 = vmatpush1.bf16.msra.mxu0 %v2322_v52 }
 0x1a0   :  { %1550 = vmatprep.subr.bf16.mxu0 %v2327_v53 }
 0x1a3   :  { %1551 = vmatpush1.bf16.msra.mxu0 %v2325_v54 }
 0x1a4   :  { %1552 = vmatprep.subr.bf16.mxu0 %v2330_v56 }
 0x1a7   :  { %1553 = vmatpush1.bf16.msra.mxu0 %v2328_v57 }
 0x1a8   :  { %1554 = vmatprep.subr.bf16.mxu0 %v2333_v58 }
 0x1ab   :  { %1555 = vmatpush1.bf16.msra.mxu0 %v2331_v59 }
 0x1e0   :  { %v1048_v0 = vpop.f32.mrb[4].mxu1 }
 0x1e1   :  { %v2017_v1 = vadd.f32 %v1048_v0, %v236_v62  ;;  %v1050_v2 = vpop.f32.mrb[5].mxu1 }
 0x1e2   :  { %v2018_v3 = vadd.f32 %v1050_v2, %v240_v63  ;;  %v1052_v4 = vpop.f32.mrb[6].mxu1 }
 0x1e3   :  { %v1067_v5 = vmul.f32 0.2, %v2017_v1  ;;  %v2019_v6 = vadd.f32 %v1052_v4, %v236_v62  ;;  %v1054_v7 = vpop.f32.mrb[7].mxu1  ;;  %vm1059_vm4 = vcmp.gt.f32.partialorder %v2017_v1, 0.0 }
 0x1e4   :  { %v1068_v8 = vmul.f32 0.2, %v2018_v3  ;;  %v2020_v9 = vadd.f32 %v1054_v7, %v240_v63  ;;  %vm1060_vm5 = vcmp.gt.f32.partialorder %v2018_v3, 0.0 }
 0x1e5   :  { %vm1063_vm6 = vcmp.gt.f32.partialorder %v2019_v6, 0.0  ;;  %v1071_v10 = vmul.f32 0.2, %v2019_v6  ;;  %v1075_v14 = vsel %vm1059_vm4, %v2017_v1, %v1067_v5 }
 0x1e6   :  { %vm1064_vm7 = vcmp.gt.f32.partialorder %v2020_v9, 0.0  ;;  %v1072_v12 = vmul.f32 0.2, %v2020_v9  ;;  %v1076_v49 = vsel %vm1060_vm5, %v2018_v3, %v1068_v8 }
 0x1e7   :  { %v1079_v15 = vsel %vm1063_vm6, %v2019_v6, %v1071_v10 }
 0x1e8   :  { %v1083_v16 = vpack.c.bf16 %v1079_v15, %v1075_v14  ;;  %v1080_v11 = vsel %vm1064_vm7, %v2020_v9, %v1072_v12 }
 0x1e9   :  { %v1084_v55 = vpack.c.bf16 %v1080_v11, %v1076_v49 }
 0x1eb   :  { %1556 = vmatprep.mubr.bf16.mxu0 %v1084_v55 }
 0x1ec   :  { %1557 = vmatmul.mubr.bf16.vlgmr.msra.gmra.mrb[4].mxu0 %v1083_v16 }
 0x2bf   :  { %v1558_v26 = vpop.f32.mrb[4].mxu0 }
 0x2c0   :  { %v2021_v27 = vadd.f32 %v1558_v26, %v1154_v24  ;;  %v1560_v28 = vpop.f32.mrb[5].mxu0 }
 0x2c1   :  { %v2022_v29 = vadd.f32 %v1560_v28, %v1158_v25  ;;  %v1562_v30 = vpop.f32.mrb[6].mxu0 }
 0x2c2   :  { %v1571_v31 = vmul.f32 0.2, %v2021_v27  ;;  %v2023_v32 = vadd.f32 %v1562_v30, %v1154_v24  ;;  %v1564_v33 = vpop.f32.mrb[7].mxu0  ;;  %vm1567_vm8 = vcmp.gt.f32.partialorder %v2021_v27, 0.0 }
 0x2c3   :  { %v1572_v34 = vmul.f32 0.2, %v2022_v29  ;;  %v2024_v35 = vadd.f32 %v1564_v33, %v1158_v25  ;;  %vm1568_vm9 = vcmp.gt.f32.partialorder %v2022_v29, 0.0 }
 0x2c4   :  { %vm1569_vm10 = vcmp.gt.f32.partialorder %v2023_v32, 0.0  ;;  %v1573_v36 = vmul.f32 0.2, %v2023_v32  ;;  %v1575_v48 = vsel %vm1567_vm8, %v2021_v27, %v1571_v31 }
 0x2c5   :  { %vm1570_vm11 = vcmp.gt.f32.partialorder %v2024_v35, 0.0  ;;  %v1574_v37 = vmul.f32 0.2, %v2024_v35  ;;  %v1576_v50 = vsel %vm1568_vm9, %v2022_v29, %v1572_v34 }
 0x2c6   :  { %v1577_v38 = vsel %vm1569_vm10, %v2023_v32, %v1573_v36 }
 0x2c7   :  { %v1579_v47 = vpack.c.bf16 %v1577_v38, %v1575_v48  ;;  %v1578_v39 = vsel %vm1570_vm11, %v2024_v35, %v1574_v37 }
 0x2c8   :  { %v1580_v40 = vpack.c.bf16 %v1578_v39, %v1576_v50 }
 0x2ca   :  { %1748 = vmatprep.mubr.bf16.mxu1 %v1580_v40 }
 0x2cb   :  { %1749 = vmatmul.mubr.bf16.vlgmr.msra.gmra.mrb[8].mxu1 %v1579_v47 }
 0x39e   :  { %v2003_v41 = vpop.f32.mrb[8].mxu1 }
 0x39f   :  { %v2004_v43 = vpop.f32.mrb[9].mxu1 }
 0x3a0   :  { %v2005_v44 = vadd.f32 %v2004_v43, %v2003_v41  ;;  %v2006_v45 = vpop.f32.mrb[10].mxu1 }
 0x3a1   :  { %v2007_v46 = vpop.f32.mrb[11].mxu1 }
 0x3a2   :  { %v1751_v51 = vadd.f32 %v2005_v44, %v1970_v42  ;;  %v2008_v13 = vadd.f32 %v2007_v46, %v2006_v45 }
 0x3a4   :  { %1757 = vst [vmem:[#allocation10] sm:$0xff] %v1751_v51  ;;  %v1754_v52 = vadd.f32 %v2008_v13, %v1970_v42 }
 0x3a6   :  { %1758 = vst [vmem:[#allocation10 + $0x8] sm:$0xff] %v1754_v52 }
 0x3a7   :  { %2449 = shalt.err (!%p2446_p8)
}
 0x3a8   :  { %s2450_s14 = scalar_lea.hbm %s2635_s7, 256 }
 0x3a9   :  { %p2451_p9 = scmp.ne.s32.totalorder %s2635_s7, %s2450_s14  ;;  %p2454_p10 = scmp.lt.u32.totalorder %s2450_s14, %s2635_s7 }
 0x3ab   :  { %p2456_p11 = pnand %p2454_p10, %p2451_p9 }
 0x3ad   :  { %2459 = shalt.err (!%p2456_p11)
}
 0x3ae   :  { %1770 = dma.vmem_to_hbm [thread:$0]  %s1765_s11, 256, %s2635_s7, [#allocation4], %s2475_s0, %s2475_s0, %s2476_s15  }
 0x3af   :  { %2466 = dma.done.wait [#allocation4], 256  }
 0x3b0   :  { %2467 = vsyncadd [#allocation4], 4294967040 }
 0x3b1   :  { %1774 = vsyncpa [#allocation3], 1 }
 0x3b2   :  { %1775 = vsyncpa [#allocation6], 1 }
 0x3b3   :  { %1776 = vsyncpa [#allocation9], 1 }
 0x3b4   :  { %1777 = vsyncpa [#allocation4], 1 }

</bundles_post_ra>
